<compile_context>
chip_gen: v7x
topology: tpu7x:2x2x1
jax: 0.10.0
libtpu: 0.0.40
codegen_flags: <defaults>
</compile_context>

<pallas_src>
import functools
import math

import jax
import jax.numpy as jnp
import numpy as np
from jax.experimental import pallas as pl
from jax.experimental.pallas import tpu as pltpu


def _round_up(x, m):
    return (x + m - 1) // m * m


def _sparse_act_linear_kernel(cnt_ref, mask_ref, x_ref, w_ref, b_ref,
                              o_ref, acc_ref, *, activation):
    i = pl.program_id(0)            # token-tile index
    k = pl.program_id(2)            # in_features reduction index
    nk = pl.num_programs(2)

    @pl.when(k == 0)
    def _():
        acc_ref[...] = jnp.zeros_like(acc_ref)

    # Skip the MXU work entirely when no token in this tile is active.
    @pl.when(cnt_ref[i] > 0)
    def _():
        acc_ref[...] += jnp.dot(x_ref[...], w_ref[...],
                                preferred_element_type=jnp.float32)

    @pl.when(k == nk - 1)
    def _():
        mask = mask_ref[...]                                   # (tile_n, 1) f32
        y = (acc_ref[...] + b_ref[...]) * mask                 # masked bias+out
        if activation is not None:                             # applied after mask,
            y = activation(y)                                  # like the module
        o_ref[...] = y.astype(o_ref.dtype)


def sparse_act_single_feed_forward(x, act_mask, weight, bias=None, *,
                                   activation=None,
                                   tile_n=256, tile_out=256, tile_k=512,
                                   compute_dtype=jnp.bfloat16):
    """JAX/Pallas equivalent of SparseActSingleFeedForwardLayer.forward
    (non-GLU path).

    x:        (..., in_features)        e.g. (B, S, in) or (B, S, K, in)
    act_mask: (...)                     same leading dims as x
    weight:   (out_features, in_features)
    bias:     (out_features,) or None
    returns:  (..., out_features)
    """
    lead = x.shape[:-1]
    in_features = x.shape[-1]
    out_features = weight.shape[0]
    N = int(np.prod(lead))

    x_flat = x.reshape(N, in_features)
    mask_flat = act_mask.reshape(N)

    # Effective tile sizes (sublane multiple of 8, lane multiple of 128).
    tile_n = min(tile_n, _round_up(N, 8))
    tile_out = min(tile_out, _round_up(out_features, 128))
    tile_k = min(tile_k, _round_up(in_features, 128))

    n_pad = _round_up(N, tile_n)
    out_pad = _round_up(out_features, tile_out)
    in_pad = _round_up(in_features, tile_k)

    # Pad + cast once in the wrapper; weight transposed once to (in, out) so
    # the kernel output lane dim is out_features (no in-kernel transpose).
    x_p = jnp.zeros((n_pad, in_pad), compute_dtype).at[:N, :in_features].set(
        x_flat.astype(compute_dtype))
    w_t = jnp.zeros((in_pad, out_pad), compute_dtype).at[
        :in_features, :out_features].set(weight.T.astype(compute_dtype))
    b_p = jnp.zeros((1, out_pad), jnp.float32)
    if bias is not None:
        b_p = b_p.at[0, :out_features].set(bias.astype(jnp.float32))

    mask_col = jnp.zeros((n_pad, 1), jnp.float32).at[:N, 0].set(
        mask_flat.astype(jnp.float32))

    n_tok_tiles = n_pad // tile_n
    tile_counts = mask_col[:, 0].reshape(n_tok_tiles, tile_n).sum(
        axis=1).astype(jnp.int32)

    grid = (n_tok_tiles, out_pad // tile_out, in_pad // tile_k)

    kernel = functools.partial(_sparse_act_linear_kernel, activation=activation)

    out_p = pl.pallas_call(
        kernel,
        out_shape=jax.ShapeDtypeStruct((n_pad, out_pad), x.dtype),
        grid_spec=pltpu.PrefetchScalarGridSpec(
            num_scalar_prefetch=1,                 # tile_counts -> SMEM
            grid=grid,
            in_specs=[
                pl.BlockSpec((tile_n, 1), lambda i, j, k, cnt: (i, 0)),        # mask
                pl.BlockSpec((tile_n, tile_k), lambda i, j, k, cnt: (i, k)),   # x
                pl.BlockSpec((tile_k, tile_out), lambda i, j, k, cnt: (k, j)), # W.T
                pl.BlockSpec((1, tile_out), lambda i, j, k, cnt: (0, j)),      # bias
            ],
            out_specs=pl.BlockSpec((tile_n, tile_out),
                                   lambda i, j, k, cnt: (i, j)),
            scratch_shapes=[pltpu.VMEM((tile_n, tile_out), jnp.float32)],
        ),
        compiler_params=pltpu.CompilerParams(
            dimension_semantics=("parallel", "parallel", "arbitrary")),
    )(tile_counts, mask_col, x_p, w_t, b_p)

    return out_p[:N, :out_features].reshape(*lead, out_features)


def reference(x, act_mask, weight, bias=None, activation=None,
              compute_dtype=jnp.bfloat16):
    """Pure-JAX reference mirroring SparseActLinear / the FFN forward."""
    xh = x.astype(compute_dtype)
    wh = weight.astype(compute_dtype)
    y = jax.lax.dot_general(
        xh.reshape(-1, x.shape[-1]), wh,
        dimension_numbers=(((1,), (1,)), ((), ())),
        preferred_element_type=jnp.float32)
    y = y.reshape(*x.shape[:-1], weight.shape[0])
    m = act_mask.astype(jnp.float32)[..., None]
    if bias is not None:
        y = (y + bias.astype(jnp.float32)) * m
    else:
        y = y * m
    if activation is not None:
        y = activation(y)
    return y.astype(x.dtype)


if __name__ == "__main__":
    # Small shapes consistent with the module's forward contract.
    B, S = 2, 16
    in_features, out_features = 192, 256   # exercises the padding path (192->256)

    key = jax.random.PRNGKey(0)
    k_x, k_m, k_w, k_b = jax.random.split(key, 4)

    # reset_parameters: uniform(-stdv, stdv) with stdv = 1/sqrt(in_features)
    stdv = 1.0 / math.sqrt(in_features)
    weight = jax.random.uniform(k_w, (out_features, in_features),
                                minval=-stdv, maxval=stdv, dtype=jnp.float32)
    bias = jax.random.uniform(k_b, (out_features,),
                              minval=-stdv, maxval=stdv, dtype=jnp.float32)

    x = jax.random.normal(k_x, (B, S, in_features), dtype=jnp.float32)
    act_mask = jax.random.bernoulli(k_m, 0.5, (B, S)).astype(jnp.int32)

    activation = jax.nn.gelu   # non-GLU activation path of the FFN layer

    # Small tiles here so the toy run exercises a multi-step (2,2,2) grid;
    # production defaults are tile_n=256, tile_out=256, tile_k=512.
    out = sparse_act_single_feed_forward(
        x, act_mask, weight, bias, activation=activation,
        tile_n=16, tile_out=128, tile_k=128)
    out = jax.block_until_ready(out)

    ref = reference(x, act_mask, weight, bias, activation=activation)
    np.testing.assert_allclose(np.asarray(out), np.asarray(ref),
                               rtol=1e-3, atol=1e-3)
    print("KERNEL_OK")
</pallas_src>

<mosaic_0001>
module attributes {stable_mosaic.version = 11 : i64} {
  func.func @_sparse_act_linear_kernel(%arg0: i32, %arg1: i32, %arg2: i32, %arg3: memref<2xi32, #tpu.memory_space<smem>>, %arg4: memref<16x1xf32, #tpu.memory_space<vmem>>, %arg5: memref<16x128xbf16, #tpu.memory_space<vmem>>, %arg6: memref<128x128xbf16, #tpu.memory_space<vmem>>, %arg7: memref<1x128xf32, #tpu.memory_space<vmem>>, %arg8: memref<16x128xf32, #tpu.memory_space<vmem>>, %arg9: memref<16x128xf32, #tpu.memory_space<vmem>>) attributes {dimension_semantics = [#tpu.dimension_semantics<parallel>, #tpu.dimension_semantics<parallel>, #tpu.dimension_semantics<arbitrary>], iteration_bounds = array<i64: 2, 2, 2>, scalar_prefetch = 1 : i64, scratch_operands = 1 : i64, tpu.core_type = #tpu.core_type<tc>, window_params = [{transform_indices = @transform_0, window_bounds = array<i64: 16, 1>}, {transform_indices = @transform_1, window_bounds = array<i64: 16, 128>}, {transform_indices = @transform_2, window_bounds = array<i64: 128, 128>}, {transform_indices = @transform_3, window_bounds = array<i64: 1, 128>}, {transform_indices = @transform_4, window_bounds = array<i64: 16, 128>}]} {
    %c0_i32 = arith.constant 0 : i32
    %0 = arith.cmpi eq, %arg2, %c0_i32 : i32
    %1 = arith.extui %0 : i1 to i32
    %c0_i32_0 = arith.constant 0 : i32
    %2 = arith.cmpi ne, %1, %c0_i32_0 : i32
    scf.if %2 {
      %cst = arith.constant 0.000000e+00 : f32
      %11 = vector.broadcast %cst : f32 to vector<16x128xf32>
      %c0 = arith.constant 0 : index
      %c0_4 = arith.constant 0 : index
      %12 = vector.load %arg9[%c0, %c0_4] : memref<16x128xf32, #tpu.memory_space<vmem>>, vector<16x128xf32>
      tpu.vector_store %arg9[%c0, %c0_4], %11 {strides = array<i32>} : memref<16x128xf32, #tpu.memory_space<vmem>>, vector<16x128xf32>,
    } else {
    }
    %3 = arith.index_cast %arg0 : i32 to index
    %4 = memref.load %arg3[%3] : memref<2xi32, #tpu.memory_space<smem>>
    %c0_i32_1 = arith.constant 0 : i32
    %5 = arith.cmpi sgt, %4, %c0_i32_1 : i32
    %6 = arith.extui %5 : i1 to i32
    %c0_i32_2 = arith.constant 0 : i32
    %7 = arith.cmpi ne, %6, %c0_i32_2 : i32
    scf.if %7 {
      %c0 = arith.constant 0 : index
      %c0_4 = arith.constant 0 : index
      %11 = vector.load %arg9[%c0, %c0_4] : memref<16x128xf32, #tpu.memory_space<vmem>>, vector<16x128xf32>
      %c0_5 = arith.constant 0 : index
      %c0_6 = arith.constant 0 : index
      %12 = vector.load %arg5[%c0_5, %c0_6] : memref<16x128xbf16, #tpu.memory_space<vmem>>, vector<16x128xbf16>
      %c0_7 = arith.constant 0 : index
      %c0_8 = arith.constant 0 : index
      %13 = vector.load %arg6[%c0_7, %c0_8] : memref<128x128xbf16, #tpu.memory_space<vmem>>, vector<128x128xbf16>
      %cst = arith.constant dense<0.000000e+00> : vector<16x128xf32>
      %14 = tpu.matmul %12, %13, %cst {dimension_numbers = #tpu.dot_dimension_numbers<[1], [0], [0], [1], [0, 0, 1, 1], [], []>} : vector<16x128xbf16>, vector<128x128xbf16>, vector<16x128xf32> -> vector<16x128xf32>
      %15 = arith.addf %11, %14 : vector<16x128xf32>
      %c0_9 = arith.constant 0 : index
      %c0_10 = arith.constant 0 : index
      %16 = vector.load %arg9[%c0_9, %c0_10] : memref<16x128xf32, #tpu.memory_space<vmem>>, vector<16x128xf32>
      tpu.vector_store %arg9[%c0_9, %c0_10], %15 {strides = array<i32>} : memref<16x128xf32, #tpu.memory_space<vmem>>, vector<16x128xf32>,
    } else {
    }
    %c1_i32 = arith.constant 1 : i32
    %8 = arith.cmpi eq, %arg2, %c1_i32 : i32
    %9 = arith.extui %8 : i1 to i32
    %c0_i32_3 = arith.constant 0 : i32
    %10 = arith.cmpi ne, %9, %c0_i32_3 : i32
    scf.if %10 {
      %c0 = arith.constant 0 : index
      %c0_4 = arith.constant 0 : index
      %11 = vector.load %arg4[%c0, %c0_4] : memref<16x1xf32, #tpu.memory_space<vmem>>, vector<16x1xf32>
      %c0_5 = arith.constant 0 : index
      %c0_6 = arith.constant 0 : index
      %12 = vector.load %arg9[%c0_5, %c0_6] : memref<16x128xf32, #tpu.memory_space<vmem>>, vector<16x128xf32>
      %c0_7 = arith.constant 0 : index
      %c0_8 = arith.constant 0 : index
      %13 = vector.load %arg7[%c0_7, %c0_8] : memref<1x128xf32, #tpu.memory_space<vmem>>, vector<1x128xf32>
      %14 = vector.broadcast %13 : vector<1x128xf32> to vector<16x128xf32>
      %15 = arith.addf %12, %14 : vector<16x128xf32>
      %16 = vector.broadcast %11 : vector<16x1xf32> to vector<16x128xf32>
      %17 = arith.mulf %15, %16 : vector<16x128xf32>
      %18 = arith.mulf %17, %17 : vector<16x128xf32>
      %19 = arith.mulf %17, %18 : vector<16x128xf32>
      %cst = arith.constant 4.471500e-02 : f32
      %20 = vector.broadcast %cst : f32 to vector<16x128xf32>
      %21 = arith.mulf %20, %19 : vector<16x128xf32>
      %22 = arith.addf %17, %21 : vector<16x128xf32>
      %cst_9 = arith.constant 0.797884583 : f32
      %23 = vector.broadcast %cst_9 : f32 to vector<16x128xf32>
      %24 = arith.mulf %23, %22 : vector<16x128xf32>
      %25 = math.tanh %24 : vector<16x128xf32>
      %cst_10 = arith.constant 1.000000e+00 : f32
      %26 = vector.broadcast %cst_10 : f32 to vector<16x128xf32>
      %27 = arith.addf %26, %25 : vector<16x128xf32>
      %cst_11 = arith.constant 5.000000e-01 : f32
      %28 = vector.broadcast %cst_11 : f32 to vector<16x128xf32>
      %29 = arith.mulf %28, %27 : vector<16x128xf32>
      %30 = arith.mulf %17, %29 : vector<16x128xf32>
      %c0_12 = arith.constant 0 : index
      %c0_13 = arith.constant 0 : index
      %31 = vector.load %arg8[%c0_12, %c0_13] : memref<16x128xf32, #tpu.memory_space<vmem>>, vector<16x128xf32>
      tpu.vector_store %arg8[%c0_12, %c0_13], %30 {strides = array<i32>} : memref<16x128xf32, #tpu.memory_space<vmem>>, vector<16x128xf32>,
    } else {
    }
    return
  }
  func.func @transform_0(%arg0: i32, %arg1: i32, %arg2: i32, %arg3: memref<2xi32, #tpu.memory_space<smem>>) -> (i32, i32) {
    %c0_i32 = arith.constant 0 : i32
    %c0_i32_0 = arith.constant 0 : i32
    return %arg0, %c0_i32 : i32, i32
  }
  func.func @transform_1(%arg0: i32, %arg1: i32, %arg2: i32, %arg3: memref<2xi32, #tpu.memory_space<smem>>) -> (i32, i32) {
    %c0_i32 = arith.constant 0 : i32
    return %arg0, %arg2 : i32, i32
  }
  func.func @transform_2(%arg0: i32, %arg1: i32, %arg2: i32, %arg3: memref<2xi32, #tpu.memory_space<smem>>) -> (i32, i32) {
    %c0_i32 = arith.constant 0 : i32
    return %arg2, %arg1 : i32, i32
  }
  func.func @transform_3(%arg0: i32, %arg1: i32, %arg2: i32, %arg3: memref<2xi32, #tpu.memory_space<smem>>) -> (i32, i32) {
    %c0_i32 = arith.constant 0 : i32
    %c0_i32_0 = arith.constant 0 : i32
    return %c0_i32, %arg1 : i32, i32
  }
  func.func @transform_4(%arg0: i32, %arg1: i32, %arg2: i32, %arg3: memref<2xi32, #tpu.memory_space<smem>>) -> (i32, i32) {
    %c0_i32 = arith.constant 0 : i32
    return %arg0, %arg1 : i32, i32
  }
}

</mosaic_0001>

<bundles_post_ra>
// kernel: tpu_custom_call.1
= control target key start
LH: loop header
LB: loop body
LE: loop exit
PB: predicated region body
PF: predicated region fallthrough
CT: control target
= control target key end

     0   :  { %s1486_s0 = inlined_call_operand.vmem [shape: s32[2], index: 0, kind: input, shape index: {}]   ;;  %s1487_s1 = inlined_call_operand.vmem [shape: f32[32,1], index: 1, kind: input, shape index: {}]   ;;  %s1488_s2 = inlined_call_operand.vmem [shape: bf16[32,256], index: 2, kind: input, shape index: {}]   ;;  %s1489_s3 = inlined_call_operand.hbm [shape: bf16[256,256], index: 3, kind: input, shape index: {}]   ;;  %s1490_s4 = inlined_call_operand.vmem [shape: f32[1,256], index: 4, kind: input, shape index: {}]   ;;  %s1491_s5 = inlined_call_operand.hbm [shape: f32[32,256], index: 5, kind: output, shape index: {}]  }
   0x1   :  { %1500 = sst [smem:[#allocation22_spill]] %s1487_s1  ;;  %s10_s20 = sshll.u32 %s1486_s0, 4  ;;  %s11_s20 = int_to_ptr.vmem [resolvable:$true] %s10_s20 }
   0x2   :  { %1501 = sst [smem:[#allocation23_spill]] %s1490_s4  ;;  %s911_s21 = scalar_lea.vmem %s11_s20, 16 }
   0x3   :  { %1502 = sst [smem:[#allocation24_spill]] %s1491_s5  ;;  %p912_p0 = scmp.ne.s32.totalorder %s11_s20, %s911_s21 }
   0x4   :  { %p916_p1 = scmp.lt.s32.totalorder %s11_s20, %s11_s20  ;;  %p917_p2 = scmp.lt.s32.totalorder %s911_s21, %s911_s21 }
   0x6   :  { %p918_p3 = por %p917_p2, %p916_p1 }
   0x8   :  { %p919_p4 = pnand %p918_p3, %p912_p0 }
   0xa   :  { %922 = shalt.err (!%p919_p4)  }
   0xb   :  { %s1109_s22 = smov [#allocation4]  }
   0xc   :  { %13 = dma.vmem_to_smem %s11_s20, 16, %s1109_s22, [#allocation3] }
   0xd   :  { %1039 = dma.done.wait [#allocation3], 16 }
   0xe   :  { %1040 = vsyncadd [#allocation3], 4294967280 }
   0xf   :  { %15 = sfence }
  0x10   :  { %16 = vsyncpa [#allocation7], 0 }
  0x11   :  { %18 = vsyncpa [#allocation7 + $0x1], 0 }
  0x12   :  { %19 = vsyncpa [#allocation8], 0 }
  0x13   :  { %21 = vsyncpa [#allocation8 + $0x1], 0  ;;  %s1155_s23 = smov 0   ;;  %s1157_s0 = smov 0  }
  0x14   :  { %s1159_s24 = smov 0   ;;  %s1161_s25 = smov 0  }
  0x15   :  { %s1163_s26 = smov 0   ;;  %s1165_s27 = smov 0  }
  0x16   :  { %s1167_s28 = smov 0   ;;  %s1169_s29 = smov 0  }
  0x17   :  { %s1171_s30 = smov 0   ;;  %s1173_s6 = smov 0  }
  0x18   :  { %s1175_s7 = smov 0   ;;  %s1177_s8 = smov 0  }
  0x19   :  { %s1179_s9 = smov 0   ;;  %s1181_s10 = smov 0  }
  0x1a   :  { %s1183_s11 = smov 0  }
  0x1b LB: > { %1503 = sst [smem:[#allocation13_spill]] %s1079_s29  ;;  %s39_s14 = sadd.s32 1, %s1095_s8  ;;  %s1107_s11 = sphi %s1183_s11, %s27_s11   ;;  %s1103_s10 = sphi %s1181_s10, %s1538_s10   ;;  %s1099_s9 = sphi %s1179_s9, %s1550_s9   ;;  %s1095_s8 = sphi %s1177_s8, %s1549_s8   ;;  %s1091_s7 = sphi %s1175_s7, %s1548_s7   ;;  %s1087_s6 = sphi %s1173_s6, %s1547_s6   ;;  %s1083_s30 = sphi %s1171_s30, %s1546_s30   ;;  %s1079_s29 = sphi %s1169_s29, %s1534_s29   ;;  %s1075_s28 = sphi %s1167_s28, %s1533_s28   ;;  %s1071_s27 = sphi %s1165_s27, %s1545_s27   ;;  %s1067_s26 = sphi %s1163_s26, %s1544_s26   ;;  %s1063_s25 = sphi %s1161_s25, %s1543_s25   ;;  %s1059_s24 = sphi %s1159_s24, %s1542_s24   ;;  %s1055_s0 = sphi %s1157_s0, %s1541_s0   ;;  %s1051_s23 = sphi %s1155_s23, %s1540_s23  }
  0x1c   : > { %1504 = sst [smem:[#allocation14_spill]] %s1083_s30  ;;  %s42_s15 = sadd.s32 1, %s1099_s9 }
  0x1d   : > { %1505 = sst [smem:[#allocation15_spill]] %s1087_s6  ;;  %p40_p5 = scmp.ge.s32.totalorder %s39_s14, 2 }
  0x1e   : > { %1506 = sst [smem:[#allocation16_spill]] %s1103_s10  ;;  %s46_s16 = sadd.s32 1, %s1103_s10 }
  0x1f   : > { %s81_s17 = sadd.s32 1, %s1079_s29  ;;  %p88_p6 = scmp.ne.s32.totalorder %s1079_s29, %s1075_s28 }
  0x20   : > { %s1552_s14 = smov (%p40_p5, %s39_s14), 0  ;;  %s1554_s15 = smov (!%p40_p5, %s42_s15), %s1099_s9 }
  0x21   : > { %1507 = sst [smem:[#allocation17_spill]] %s1552_s14  ;;  %s77_s18 = ssub.s32 %s1095_s8, %s1552_s14 }
  0x22   : > { %p89_p7 = scmp.eq.s32.totalorder %s1107_s11, 0  ;;  %p44_p8 = scmp.ge.s32.totalorder %s1554_s15, 2 }
  0x23   : > { %s109_s19 = sadd.s32 1, %s1071_s27  ;;  %p116_p10 = scmp.ne.s32.totalorder %s1071_s27, %s1067_s26 }
  0x24   : > { %p1245_p9 = por %p89_p7, %p88_p6  ;;  %s1556_s15 = smov (%p44_p8, %s1554_s15), 0 }
  0x25   : > { %1509 = sst [smem:[#allocation18_spill]] %s1556_s15  ;;  %s1558_s16 = smov (!%p44_p8, %s46_s16), %s1103_s10 }
  0x26   : > { %s105_s21 = ssub.s32 %s1099_s9, %s1556_s15  ;;  %p1256_p11 = por %p116_p10, %p89_p7 }
  0x27   : > { %p48_p12 = scmp.ge.s32.totalorder %s1558_s16, 2  ;;  %s106_s13 = sor.u32 %s105_s21, %s77_s18 }
  0x28   : > { %p107_p13 = scmp.eq.s32.totalorder %s106_s13, 0  ;;  %p122_p0 = scmp.ne.s32.totalorder %s1067_s26, %s1063_s25 }
  0x29   : > { %s1560_s16 = smov (%p48_p12, %s1558_s16), 0  ;;  %s1513_s14 = sadd.s32 4294967295, %s1107_s11  }
  0x2a   : > { %1511 = sst [smem:[#allocation19_spill]] %s1560_s16  ;;  %s76_s15 = ssub.s32 %s1103_s10, %s1560_s16 }
  0x2b   : > { %s1265_s12 = scalar_select %p107_p13, %s1071_s27, %s109_s19  }
  0x2c   : > { %p123_p1 = scmp.eq.s32.totalorder %s1513_s14, 0  ;;  %s78_s5 = sor.u32 %s77_s18, %s76_s15 }
  0x2d   : > { %1512 = sst [smem:[#allocation20_spill]] %s1265_s12  ;;  %s160_s30 = sor.u32 %s105_s21, %s76_s15 }
  0x2e   : > { %p79_p2 = scmp.eq.s32.totalorder %s78_s5, 0  ;;  %p1271_p3 = por %p123_p1, %p122_p0 }
  0x2f   : > { %p161_p4 = scmp.eq.s32.totalorder %s160_s30, 0  ;;  %s163_s13 = sadd.s32 1, %s1059_s24 }
  0x30   : > { %s1277_s1 = scalar_select %p79_p2, %s1079_s29, %s81_s17  }
  0x31   : > { %s1280_s25 = scalar_select %p161_p4, %s1059_s24, %s163_s13  }
  0x32   : > { %1515 = sst [smem:[#allocation21_spill]] %s1277_s1  ;;  %p173_p5 = scmp.ne.s32.totalorder %s1059_s24, %s1055_s0 }
  0x33   : > { %s1516_s6 = smov %s1513_s14  ;;  %p179_p7 = scmp.ne.s32.totalorder %s1055_s0, %s1051_s23 }
  0x34   : > { %p174_p6 = scmp.eq.s32.totalorder %s1516_s6, 7  ;;  %s1517_s19 = sadd.s32 4294967294, %s1107_s11  }
  0x35   : > { %p180_p8 = scmp.eq.s32.totalorder %s1517_s19, 7  ;;  %p691_p13 = scmp.ge.s32.totalorder %s1107_s11, 8 }
  0x36   : > { %p1290_p10 = por %p174_p6, %p173_p5 }
  0x37   : > { %p1294_p12 = por %p180_p8, %p179_p7  ;;  %196 = sbr.rel (%p691_p13) target bundleno = 97 (0x61), region = 16 }
  0x38   : > { %s1518_s14 = scalar_select %p1290_p10, 1, 0 }
  0x39   : > { %s1519_s5 = scalar_select %p1294_p12, 1, 0 }
  0x3e   : > { %208 = sbr.rel (!%p1245_p9) target bundleno = 69 (0x45), region = 24  ;;  %s210_s30 = sand.u32 (%p1245_p9), 1, %s1079_s29  }
  0x3f   : > { %s725_s6 = sshll.u32 (%p1245_p9), %s1103_s10, 2  ;;  %s692_s15 = sshll.u32 (%p1245_p9), %s210_s30, 3 }
  0x40   : > { %s215_s17 = sadd.s32 (%p1245_p9), %s1095_s8, %s725_s6  ;;  %s212_s16 = scalar_lea.vmem (%p1245_p9), [#allocation5], %s692_s15 }
  0x41   : > { %s695_s18 = sshll.u32 (%p1245_p9), %s215_s17, 2 }
  0x42   : > { %s217_s19 = scalar_lea.vmem (%p1245_p9), %s1488_s2, %s695_s18 }
  0x43   : > { %v233_v0 = vld [vmem:[%s217_s19] sm:$0xf] (%p1245_p9)  ;;  %v235_v1 = vld [vmem:[%s217_s19 + $0x8] sm:$0xf] (%p1245_p9) }
  0x44   : > { %234 = vst [vmem:[%s212_s16] sm:$0xf] (%p1245_p9), %v233_v0  ;;  %236 = vst [vmem:[%s212_s16 + $0x4] sm:$0xf] (%p1245_p9), %v235_v1 }
  0x45 PF: > { %s264_s20 = sand.u32 1, %s1071_s27   ;;  %s726_s1 = sshll.u32 %s1095_s8, 5 }
  0x46   : > { %s696_s10 = sshll.u32 %s264_s20, 6  ;;  %s274_s30 = sadd.s32 %s1099_s9, %s726_s1 }
  0x47   : > { %s699_s6 = sshll.u32 %s274_s30, 6  ;;  %s268_s17 = scalar_lea.vmem [#allocation6], %s696_s10 }
  0x48   : > { %s277_s29 = sshll.u32 %s268_s17, 4  ;;  %s1313_s18 = scalar_lea.hbm %s1489_s3, %s699_s6  ;;  %s1315_s29 = int_to_ptr.vmem [resolvable:$true] %s277_s29 }
  0x49   : > { %s1317_s16 = scalar_lea.sflag [#allocation7], %s264_s20  ;;  %s923_s15 = scalar_lea.hbm %s1313_s18, 1024 }
  0x4a   : > { %p924_p9 = scmp.ne.s32.totalorder %s1313_s18, %s923_s15  ;;  %s927_s13 = scalar_lea.hbm %s1489_s3, 4096 }
  0x4b   : > { %p928_p2 = scmp.lt.u32.totalorder %s1313_s18, %s1489_s3  ;;  %p929_p4 = scmp.lt.u32.totalorder %s927_s13, %s923_s15 }
  0x4c   : > { %p925_p0 = pnand %p924_p9, %p1256_p11  ;;  %p931_p6 = scmp.lt.u32.totalorder %s923_s15, %s1313_s18 }
  0x4d   : > { %p930_p5 = por %p929_p4, %p928_p2 }
  0x4e   : > { %p926_p1 = pneg %p925_p0 }
  0x4f   : > { %p932_p7 = por %p931_p6, %p930_p5 }
  0x51   : > { %p933_p8 = pnand %p932_p7, %p926_p1 }
  0x53   : > { %936 = shalt.err (!%p933_p8)
}
  0x54   : > { %s937_s20 = scalar_lea.vmem %s1315_s29, 1024  ;;  %s1110_s30 = smov [#allocation6]  }
  0x55   : > { %p938_p13 = scmp.ne.s32.totalorder %s1315_s29, %s937_s20  ;;  %s941_s6 = sshll.u32 %s1110_s30, 4  ;;  %s942_s6 = int_to_ptr.vmem [resolvable:$false] %s941_s6 }
  0x56   : > { %s943_s17 = scalar_lea.vmem %s942_s6, 2048  ;;  %p944_p12 = scmp.lt.s32.totalorder %s1315_s29, %s942_s6 }
  0x57   : > { %p939_p9 = pnand %p938_p13, %p1256_p11  ;;  %p945_p10 = scmp.lt.s32.totalorder %s943_s17, %s937_s20 }
  0x59   : > { %p940_p0 = pneg %p939_p9  ;;  %p946_p2 = por %p945_p10, %p944_p12 }
  0x5b   : > { %p947_p4 = pnand %p946_p2, %p940_p0 }
  0x5d   : > { %950 = shalt.err (!%p947_p4)
}
  0x5e   : > { %s1111_s21 = smov 128   ;;  %s1112_s15 = smov 64  }
  0x5f   : > { %s1113_s1 = smov 4  }
  0x60   : > { %757 = dma.hbm_to_vmem [thread:$0]  (%p1256_p11), %s1313_s18, 1024, %s1315_s29, %s1317_s16, %s1111_s21, %s1112_s15, %s1113_s1  }
  0x61 PF: > { %p700_p1 = scmp.ge.s32.totalorder %s1107_s11, 1  ;;  %p291_p5 = scmp.lt.s32.totalorder %s1107_s11, 9 }
  0x63   : > { %p292_p6 = pnand %p700_p1, %p291_p5 }
  0x64   : > { %s298_s10 = sand.u32 (!%p292_p6), 1, %s1075_s28   ;;  %s304_s13 = sand.u32 (!%p292_p6), 1, %s1067_s26  }
  0x65   : > { %295 = sbr.rel (%p292_p6) target bundleno = 586 (0x24a), region = 73  ;;  %s1345_s12 = sshll.u32 (!%p292_p6), %s298_s10, 3 }
  0x66   : > { %s702_s19 = sshll.u32 (!%p292_p6), %s304_s13, 6  ;;  %s305_s30 = scalar_lea.sflag (!%p292_p6), [#allocation7], %s304_s13 }
  0x67   : > { %s1348_s22 = scalar_lea.vmem (!%p292_p6), [#allocation6], %s702_s19 }
  0x6c   : > { %1042 = dma.done.wait (%p1271_p3), %s305_s30, 1024  }
  0x6d   : > { %1044 = vsyncadd (%p1271_p3), %s305_s30, 4294966272  ;;  %s1520_s29 = sld [smem:[#allocation15_spill]]  ;;  %s342_s28 = sand.u32 1, %s1055_s0  }
  0x6e   : > { %s704_s18 = sshll.u32 %s1091_s7, 1  ;;  %s703_s16 = sshll.u32 %s342_s28, 4 }
  0x6f   : > { %p346_p11 = scmp.lt.s32.totalorder %s704_s18, 3  ;;  %s1521_s4 = sld [smem:[#allocation22_spill]] }
  0x70   : > { %s1522_s13 = sld [smem:[#allocation23_spill]]  ;;  %s1371_s30 = scalar_lea.vmem [#allocation9], %s703_s16 }
  0x71   : > { %s1562_s18 = smov (!%p346_p11, %s704_s18), 3  ;;  %s1523_s20 = sld [smem:[#allocation14_spill]] }
  0x72   : > { %s705_s6 = sshll.u32 %s1562_s18, 3 }
  0x73   : > { %p353_p10 = scmp.lt.s32.totalorder %s1520_s29, 1 }
  0x75   : > { %s1564_s29 = smov (!%p353_p10, %s1520_s29), 1  ;;  %s1365_s15 = scalar_lea.vmem %s1521_s4, %s705_s6 }
  0x76   : > { %s355_s19 = scalar_lea.vmem %s1522_s13, %s1564_s29 }
  0x77   : > { %p706_p3 = scmp.ne.s32.totalorder %s1523_s20, 0 }
  0x78   : > { %v1114_v2 = vmov (!%p706_p3), 0.0  }
  0x79   : > { %361 = sbr.rel (%p706_p3) target bundleno = 128 (0x80), region = 85  ;;  %362 = vst [vmem:[#allocation2] sm:$0xff] (!%p706_p3), %v1114_v2  ;;  %363 = vst [vmem:[#allocation2 + $0x8] sm:$0xff] (!%p706_p3), %v1114_v2 }
  0x80 PF: > { %s364_s18 = sld [smem:[#allocation4 + %s1091_s7]] }
  0x86   : > { %p707_p12 = scmp.le.s32.totalorder %s364_s18, 0 }
  0x87   : > { %v897_v3 = vld [vmem:[%s1348_s22] sm:$0xff] (!%p707_p12)   ;;  %v1115_v4 = vmov (!%p707_p12), 0.0   ;;  %v898_v5 = vld [vmem:[%s1348_s22 + $0x8] sm:$0xff] (!%p707_p12)   ;;  %vm1116_vm0 = vmmov (!%p707_p12), 0   ;;  %v899_v6 = vld [vmem:[%s1348_s22 + $0x10] sm:$0xff] (!%p707_p12)   ;;  %s1524_s20 = scalar_lea.vmem (!%p707_p12), [#allocation5], %s1345_s12 }
  0x88   : > { %368 = sbr.rel (%p707_p12) target bundleno = 385 (0x181), region = 89  ;;  %737 = vmatprep.subr.bf16.mxu0 (!%p707_p12), %v1115_v4  ;;  %753 = vmatprep.mubr.msk.bf16.mxu0 (!%p707_p12), %vm1116_vm0, %v1115_v4  ;;  %v900_v7 = vld [vmem:[%s1348_s22 + $0x18] sm:$0xff] (!%p707_p12)   ;;  %v901_v8 = vld [vmem:[%s1348_s22 + $0x20] sm:$0xff] (!%p707_p12)   ;;  %v902_v9 = vld [vmem:[%s1348_s22 + $0x28] sm:$0xff] (!%p707_p12)  }
  0x89   : > { %738 = vmatpush3.bf16.msra.mxu0 (!%p707_p12), %v897_v3  ;;  %v903_v10 = vld [vmem:[%s1348_s22 + $0x30] sm:$0xff] (!%p707_p12)   ;;  %v904_v11 = vld [vmem:[%s1348_s22 + $0x38] sm:$0xff] (!%p707_p12)   ;;  %v369_v13 = vld [vmem:[#allocation2] sm:$0xff] (!%p707_p12) }
  0x8a   : > { %739 = vmatprep.subr.bf16.mxu0 (!%p707_p12), %v1115_v4  ;;  %v905_v12 = vld [vmem:[%s1524_s20] sm:$0xff] (!%p707_p12)   ;;  %v370_v15 = vld [vmem:[#allocation2 + $0x8] sm:$0xff] (!%p707_p12) }
  0x8d   : > { %740 = vmatpush3.bf16.msra.mxu0 (!%p707_p12), %v898_v5 }
  0x8e   : > { %741 = vmatprep.subr.bf16.mxu0 (!%p707_p12), %v1115_v4 }
  0x91   : > { %742 = vmatpush3.bf16.msra.mxu0 %v899_v6 }
  0x92   : > { %743 = vmatprep.subr.bf16.mxu0 %v1115_v4 }
  0x95   : > { %744 = vmatpush3.bf16.msra.mxu0 %v900_v7 }
  0x96   : > { %745 = vmatprep.subr.bf16.mxu0 %v1115_v4 }
  0x99   : > { %746 = vmatpush3.bf16.msra.mxu0 %v901_v8 }
  0x9a   : > { %747 = vmatprep.subr.bf16.mxu0 %v1115_v4 }
  0x9d   : > { %748 = vmatpush3.bf16.msra.mxu0 %v902_v9 }
  0x9e   : > { %749 = vmatprep.subr.bf16.mxu0 %v1115_v4 }
  0xa1   : > { %750 = vmatpush3.bf16.msra.mxu0 %v903_v10 }
  0xa2   : > { %751 = vmatprep.subr.bf16.mxu0 %v1115_v4 }
  0xa5   : > { %752 = vmatpush3.bf16.msra.mxu0 %v904_v11 }
  0xa8   : > { %754 = vmatmul.mubr.bf16.vlgmr.msra.gmra.mrb[0].mxu0 %v905_v12 }
 0x17b   : > { %v477_v14 = vpop.f32.mrb[0].mxu0 }
 0x17c   : > { %v484_v16 = vadd.f32 %v477_v14, %v369_v13  ;;  %v755_v17 = vpop.f32.mrb[1].mxu0 }
 0x17d   : > { %v480_v18 = vpop.f32.mrb[2].mxu0 }
 0x17e   : > { %486 = vst [vmem:[#allocation2] sm:$0xff] %v484_v16  ;;  %v485_v19 = vadd.f32 %v480_v18, %v370_v15  ;;  %v756_v20 = vpop.f32.mrb[3].mxu0 }
 0x180   : > { %487 = vst [vmem:[#allocation2 + $0x8] sm:$0xff] %v485_v19 }
 0x181 PF: > { %s1525_s16 = sld [smem:[#allocation14_spill]] }
 0x187   : > { %p717_p7 = scmp.ne.s32.totalorder %s1525_s16, 1 }
 0x188   : > { %v492_v21 = vld [vmem:[%s1365_s15] sm:$0xff] (!%p717_p7)  ;;  %v1117_v22 = vmov (!%p717_p7), 0   ;;  %v493_v23 = vld [vmem:[%s1365_s15 + $0x8] sm:$0xff] (!%p717_p7) }
 0x189   : > { %491 = sbr.rel (%p717_p7) target bundleno = 556 (0x22c), region = 93  ;;  %906 = vset.pattern.permute.xlu0 (!%p717_p7), %v1117_v22  ;;  %v494_v24 = vld [vmem:[#allocation2] sm:$0xff] (!%p717_p7)  ;;  %v495_v27 = vld [vmem:[#allocation2 + $0x8] sm:$0xff] (!%p717_p7) }
 0x18a   : > { %507 = vperm.xlu0 (!%p717_p7), %906, %v492_v21   ;;  %v718_v25 = vld [vmem:[%s355_s19] ss:$0 sm:$0xff] (!%p717_p7) }
 0x18b   : > { %v503_v26 = vadd.f32 (!%p717_p7), %v718_v25, %v494_v24  ;;  %v504_v30 = vadd.f32 (!%p717_p7), %v718_v25, %v495_v27 }
 0x18e   : > { %512 = vperm.xlu0 (!%p717_p7), %906, %v493_v23  }
 0x209   : > { %v508_v28 = vpop.permute.xlu0 %507 }
 0x20a   : > { %v515_v29 = vmul.f32 %v508_v28, %v503_v26 }
 0x20c   : > { %v517_v31 = vmul.f32 %v515_v29, %v515_v29 }
 0x20d   : > { %v513_v32 = vpop.permute.xlu0 %512 }
 0x20e   : > { %v519_v33 = vmul.f32 %v517_v31, %v515_v29  ;;  %v516_v34 = vmul.f32 %v513_v32, %v504_v30 }
 0x210   : > { %v521_v35 = vmul.f32 0.044715, %v519_v33  ;;  %v518_v36 = vmul.f32 %v516_v34, %v516_v34 }
 0x212   : > { %v523_v37 = vadd.f32 %v521_v35, %v515_v29  ;;  %v520_v38 = vmul.f32 %v518_v36, %v516_v34 }
 0x214   : > { %v525_v39 = vmul.f32 0.7978846, %v523_v37  ;;  %v522_v40 = vmul.f32 0.044715, %v520_v38 }
 0x216   : > { %907 = vtanh.f32 %v525_v39  ;;  %v524_v41 = vadd.f32 %v522_v40, %v516_v34 }
 0x218   : > { %v526_v42 = vmul.f32 0.7978846, %v524_v41 }
 0x21a   : > { %909 = vtanh.f32 %v526_v42 }
 0x220   : > { %v908_v43 = vpop.eup %907 }
 0x221   : > { %v529_v44 = vadd.f32 1.0, %v908_v43 }
 0x223   : > { %v531_v45 = vmul.f32 0.5, %v529_v44 }
 0x224   : > { %v910_v46 = vpop.eup %909 }
 0x225   : > { %v533_v47 = vmul.f32 %v531_v45, %v515_v29  ;;  %v530_v48 = vadd.f32 1.0, %v910_v46 }
 0x227   : > { %535 = vst [vmem:[%s1371_s30] sm:$0xff] %v533_v47  ;;  %v532_v49 = vmul.f32 0.5, %v530_v48 }
 0x229   : > { %v534_v50 = vmul.f32 %v532_v49, %v516_v34 }
 0x22b   : > { %536 = vst [vmem:[%s1371_s30 + $0x8] sm:$0xff] %v534_v50 }
 0x22c PF: > { %s1527_s29 = sld [smem:[#allocation15_spill]]  ;;  %s727_s17 = sshll.u32 %s1091_s7, 2 }
 0x22d   : > { %s553_s4 = sshll.u32 %s1371_s30, 4  ;;  %s1528_s13 = sld [smem:[#allocation24_spill]]  ;;  %s1398_s4 = int_to_ptr.vmem [resolvable:$true] %s553_s4 }
 0x22e   : > { %s1407_s18 = scalar_lea.sflag [#allocation8], %s342_s28  ;;  %s951_s20 = scalar_lea.vmem %s1398_s4, 256 }
 0x22f   : > { %p952_p8 = scmp.ne.s32.totalorder %s1398_s4, %s951_s20  ;;  %p1529_p13 = scmp.ne.s32.totalorder %s1518_s14, 0 }
 0x230   : > { %s1118_s7 = smov [#allocation9]  }
 0x231   : > { %p953_p9 = pnand %p952_p8, %p1529_p13  ;;  %s955_s30 = sshll.u32 %s1118_s7, 4  ;;  %s956_s30 = int_to_ptr.vmem [resolvable:$false] %s955_s30 }
 0x232   : > { %s550_s21 = sadd.s32 %s1527_s29, %s727_s17  ;;  %s957_s16 = scalar_lea.vmem %s956_s30, 512 }
 0x233   : > { %s722_s15 = sshll.u32 %s550_s21, 7  ;;  %p954_p0 = pneg %p953_p9 }
 0x234   : > { %s1403_s19 = scalar_lea.hbm %s1528_s13, %s722_s15  ;;  %p958_p2 = scmp.lt.s32.totalorder %s1398_s4, %s956_s30 }
 0x235   : > { %p959_p4 = scmp.lt.s32.totalorder %s957_s16, %s951_s20 }
 0x237   : > { %p960_p1 = por %p959_p4, %p958_p2 }
 0x239   : > { %p961_p5 = pnand %p960_p1, %p954_p0 }
 0x23b   : > { %964 = shalt.err (!%p961_p5)
}
 0x23c   : > { %s965_s28 = scalar_lea.hbm %s1403_s19, 256  ;;  %s969_s6 = scalar_lea.hbm %s1528_s13, 1024 }
 0x23d   : > { %p966_p6 = scmp.ne.s32.totalorder %s1403_s19, %s965_s28  ;;  %p970_p3 = scmp.lt.u32.totalorder %s1403_s19, %s1528_s13 }
 0x23e   : > { %p971_p12 = scmp.lt.u32.totalorder %s969_s6, %s965_s28  ;;  %p973_p8 = scmp.lt.u32.totalorder %s965_s28, %s1403_s19 }
 0x23f   : > { %p967_p11 = pnand %p966_p6, %p1529_p13 }
 0x240   : > { %p972_p7 = por %p971_p12, %p970_p3 }
 0x241   : > { %p968_p10 = pneg %p967_p11 }
 0x242   : > { %p974_p9 = por %p973_p8, %p972_p7 }
 0x244   : > { %p975_p0 = pnand %p974_p9, %p968_p10 }
 0x246   : > { %978 = shalt.err (!%p975_p0)
}
 0x247   : > { %s1119_s21 = smov 128   ;;  %s1120_s15 = smov 256  }
 0x248   : > { %s1121_s1 = smov 8  }
 0x249   : > { %759 = dma.vmem_to_hbm [thread:$0]  (%p1529_p13), %s1398_s4, 256, %s1403_s19, %s1407_s18, %s1119_s21, %s1120_s15, %s1121_s1  }
 0x24a PF: > { %p765_p2 = scmp.ge.s32.totalorder %s1107_s11, 2  ;;  %s568_s10 = sand.u32 1, %s1051_s23  }
 0x24b   : > { %p1530_p4 = scmp.ne.s32.totalorder %s1519_s5, 0  ;;  %s569_s20 = scalar_lea.sflag [#allocation8], %s568_s10 }
 0x24d   : > { %p762_p1 = pnand %p765_p2, %p1530_p4 }
 0x24f   : > { %1046 = dma.done.wait (!%p762_p1), %s569_s20, 256  }
 0x250   : > { %1048 = vsyncadd (!%p762_p1), %s569_s20, 4294967040  ;;  %s27_s11 = sadd.s32 1, %s1107_s11   ;;  %s1532_s14 = sld [smem:[#allocation20_spill]] }
 0x251   : > { %p1436_p5 = scmp.ge.s32.totalorder %s27_s11, 10   ;;  %s1533_s28 = sld [smem:[#allocation13_spill]] }
 0x252   : > { %s1534_s29 = sld [smem:[#allocation21_spill]]  ;;  %s1535_s5 = sld [smem:[#allocation16_spill]] }
 0x253   : > { %s1536_s4 = sld [smem:[#allocation17_spill]]  ;;  %s1537_s19 = sld [smem:[#allocation18_spill]] }
 0x254   : > { %s1538_s10 = sld [smem:[#allocation19_spill]]  ;;  %s1540_s23 = smov %s1055_s0 }
 0x255   : > { %s1541_s0 = smov %s1059_s24  ;;  %s1542_s24 = smov %s1280_s25 }
 0x256   : > { %s1543_s25 = smov %s1067_s26  ;;  %s1544_s26 = smov %s1071_s27 }
 0x257   : > { %s1545_s27 = smov %s1532_s14  ;;  %s1546_s30 = smov %s1095_s8 }
 0x258   : > { %s1547_s6 = smov %s1099_s9  ;;  %s1548_s7 = smov %s1535_s5 }
 0x259   : > { %s1549_s8 = smov %s1536_s4  ;;  %s1550_s9 = smov %s1537_s19 }
 0x25a   :  { %26 = sbr.rel (!%p1436_p5) target bundleno = 27 (0x1b), region = 148 }
 0x261   :  { %574 = vsyncpa [#allocation7], 1 }
 0x262   :  { %576 = vsyncpa [#allocation7 + $0x1], 1 }
 0x263   :  { %577 = vsyncpa [#allocation8], 1 }
 0x264   :  { %579 = vsyncpa [#allocation8 + $0x1], 1 }

</bundles_post_ra>
